<compile_context>
chip_gen: v7x
topology: tpu7x:2x2x1
jax: 0.10.0
libtpu: 0.0.40
codegen_flags: <defaults>
</compile_context>

<pallas_src>
import functools

import jax
import jax.numpy as jnp
import numpy as np
from jax.experimental import pallas as pl
from jax.experimental.pallas import tpu as pltpu


def _round_up(v, m):
    return -(-v // m) * m


def _choose_batch_tile(B, SD, F, P):
    """Rows per grid step (batch tile)."""
    if B <= 8:
        return B                      # block == full dim: always legal, 1 step
    # >= 2 grid steps so both v7x TensorCores get work; up to 512-row tiles
    # (mem-bound DMA efficiency is ~85% of HBM roofline at 512-row rectangles).
    tb = min(512, _round_up(-(-B // 2), 8))
    # Clamp against VMEM: double-buffered source tile + ~5 (TB, F) f32
    # in-kernel temporaries + double-buffered output tiles.
    bytes_per_row = 4 * (2 * SD + 6 * F + 4 * P)
    budget = 24 * 1024 * 1024
    max_rows = max(8, (budget // max(bytes_per_row, 1)) // 8 * 8)
    return max(8, min(tb, max_rows))


# -----------------------------------------------------------------------------
# Single kernel: differencing + K-tap conv + two matmuls + per-tile stats.
# -----------------------------------------------------------------------------
def arima_kernel(conv_ref, src_ref, diff_ref, ar_w_ref, ma_w_ref,
                 ar_ref, ma_ref, stats_ref, *, F, D, K, TB, B):
    # conv_ref : SMEM (K + 1,)   K conv taps followed by the conv bias
    # src_ref  : VMEM (TB, S*D)  batch tile of the flattened source
    # diff_ref : VMEM (1, F)     diff parameter tiled over time steps
    # ar_w_ref : VMEM (F, P)     AR linear weight (in, out)
    # ma_w_ref : VMEM (F, P)     MA linear weight (in, out)
    # ar_ref   : VMEM (TB, P)    x @ ar_w                (biases added later)
    # ma_ref   : VMEM (TB, P)    (x - mean) @ ma_w       (1/std applied later)
    # stats_ref: VMEM (1, 8,128) per-tile [sum, sum_sq] in lanes 0/1 of row 0
    b = pl.program_id(0)

    src = src_ref[...]                                  # (TB, S*D)
    x = src[:, D:] - src[:, :F] * diff_ref[...]         # (TB, F) differenced

    # "MA" Conv1d(1, 1, K, padding=(K-1)//2) as K shifted multiply-adds (VPU).
    pad = (K - 1) // 2
    if pad > 0:
        z = jnp.zeros((x.shape[0], pad), jnp.float32)
        xp = jnp.concatenate([z, x, z], axis=1)          # (TB, F + 2*pad)
    else:
        xp = x
    mean = jnp.zeros_like(x) + conv_ref[K]               # conv bias
    for k in range(K):                                   # static, K tiny
        mean = mean + conv_ref[k] * xp[:, k:k + F]

    # Two MXU pushes on separate weight refs (no lane concatenate).  The
    # 1/std scaling, +mu and the linear biases are applied in the epilogue.
    ar_ref[...] = jnp.dot(x, ar_w_ref[...], preferred_element_type=jnp.float32)
    ma_ref[...] = jnp.dot(x - mean, ma_w_ref[...],
                          preferred_element_type=jnp.float32)

    # Per-tile partial stats of the differenced series.  The source is NOT
    # padded in HBM, so the ragged last tile contains garbage rows — mask them
    # out before summing (jnp.where also neutralizes NaN/Inf garbage).
    row = jax.lax.broadcasted_iota(jnp.int32, x.shape, 0) + b * TB
    xm = jnp.where(row < B, x, 0.0)
    s = jnp.sum(xm)
    ss = jnp.sum(xm * xm)
    lane = jax.lax.broadcasted_iota(jnp.int32, (8, 128), 1)
    sub = jax.lax.broadcasted_iota(jnp.int32, (8, 128), 0)
    tile = jnp.where((sub == 0) & (lane == 0), s,
                     jnp.where((sub == 0) & (lane == 1), ss, 0.0))
    stats_ref[...] = tile.reshape(1, 8, 128)


# -----------------------------------------------------------------------------
# Wrapper
# -----------------------------------------------------------------------------
def arima_forward(source, params, pred_len):
    B, S, D = source.shape
    F = (S - 1) * D
    P = pred_len * D
    SD = S * D
    K = params["conv_w"].shape[0]

    TB = _choose_batch_tile(B, SD, F, P)
    nbt = -(-B // TB)

    src_flat = source.reshape(B, SD).astype(jnp.float32)
    diff_t = jnp.tile(params["diff"][:D], S - 1).reshape(1, F).astype(jnp.float32)
    ar_w = params["ar_w"].astype(jnp.float32)
    ma_w = params["ma_w"].astype(jnp.float32)
    conv = jnp.concatenate(
        [params["conv_w"].reshape(-1), params["conv_b"].reshape(-1)]
    ).astype(jnp.float32)                                            # (K+1,)

    cost = pl.CostEstimate(
        flops=int(4 * B * F * P + B * F * (2 * K + 8)),
        transcendentals=0,
        bytes_accessed=int(4 * (B * SD + 2 * F * P + F + 2 * B * P
                                + nbt * 1024 + K + 1)),
    )

    ar_raw, ma_raw, part = pl.pallas_call(
        functools.partial(arima_kernel, F=F, D=D, K=K, TB=TB, B=B),
        out_shape=(
            jax.ShapeDtypeStruct((B, P), jnp.float32),
            jax.ShapeDtypeStruct((B, P), jnp.float32),
            jax.ShapeDtypeStruct((nbt, 8, 128), jnp.float32),
        ),
        grid=(nbt,),
        in_specs=[
            pl.BlockSpec(memory_space=pltpu.MemorySpace.SMEM),   # conv taps+bias
            pl.BlockSpec((TB, SD), lambda b: (b, 0)),            # source tile
            pl.BlockSpec((1, F), lambda b: (0, 0)),              # diff (replicated)
            pl.BlockSpec((F, P), lambda b: (0, 0)),              # ar weight
            pl.BlockSpec((F, P), lambda b: (0, 0)),              # ma weight
        ],
        out_specs=(
            pl.BlockSpec((TB, P), lambda b: (b, 0)),
            pl.BlockSpec((TB, P), lambda b: (b, 0)),
            pl.BlockSpec((1, 8, 128), lambda b: (b, 0, 0)),
        ),
        compiler_params=pltpu.CompilerParams(
            dimension_semantics=("parallel",),
            vmem_limit_bytes=40 * 1024 * 1024),
        cost_estimate=cost,
    )(conv, src_flat, diff_t, ar_w, ma_w)

    # Tiny O(B*P) epilogue in XLA: combine per-tile stats, apply 1/std (only
    # scales the MA matmul), global mean and the two linear biases.
    n = float(B * F)
    total = jnp.sum(part[:, 0, 0])
    total_sq = jnp.sum(part[:, 0, 1])
    mu = total / n
    var = (total_sq - n * mu * mu) / (n - 1.0)        # unbiased, == torch.std
    inv_std = jax.lax.rsqrt(var)
    bias = (params["ar_b"] + params["ma_b"]).reshape(1, P).astype(jnp.float32)
    out = ar_raw + inv_std * ma_raw + bias + mu
    return out.reshape(B, pred_len, D)


# -----------------------------------------------------------------------------
# Pure-JAX reference (replica of the PyTorch forward) for verification.
# -----------------------------------------------------------------------------
def arima_reference(source, params, pred_len):
    B, S, D = source.shape
    diff = params["diff"][:D]
    sd = source[:, 1:, :] - source[:, :-1, :] * diff[None, None, :]
    x = sd.reshape(B, -1)
    F = x.shape[1]
    ar = x @ params["ar_w"] + params["ar_b"]
    K = params["conv_w"].shape[0]
    pad = (K - 1) // 2
    xp = jnp.pad(x, ((0, 0), (pad, pad)))
    mean = params["conv_b"][0] + sum(params["conv_w"][k] * xp[:, k:k + F]
                                     for k in range(K))
    res = (x - mean) / jnp.std(x, ddof=1)
    ma = res @ params["ma_w"] + params["ma_b"] + jnp.mean(x)
    out = ar + ma
    return out.reshape(B, pred_len, D)


if __name__ == "__main__":
    B, D, S, PRED_LEN, K = 2, 4, 8, 4, 3      # input_dim=4, seq_len=8, pred_len=4
    F = (S - 1) * D
    P = PRED_LEN * D

    key = jax.random.PRNGKey(0)
    ks = jax.random.split(key, 9)
    # Synthetic parameters (shapes from ARIMA.__init__); linear weights stored
    # transposed (in, out) so y = x @ W + b.  `diff` is zeros in torch's
    # __init__ but we use small random values for a non-trivial test.
    params = {
        "ar_w": 0.1 * jax.random.normal(ks[0], (F, P), jnp.float32),
        "ar_b": 0.1 * jax.random.normal(ks[1], (P,), jnp.float32),
        "ma_w": 0.1 * jax.random.normal(ks[2], (F, P), jnp.float32),
        "ma_b": 0.1 * jax.random.normal(ks[3], (P,), jnp.float32),
        "conv_w": 0.1 * jax.random.normal(ks[4], (K,), jnp.float32),
        "conv_b": 0.1 * jax.random.normal(ks[5], (1,), jnp.float32),
        "diff": 0.1 * jax.random.normal(ks[6], (P,), jnp.float32),
    }
    source = jax.random.normal(ks[7], (B, S, D), jnp.float32)
    target = jnp.zeros((B, PRED_LEN, D), jnp.float32)   # unused by forward

    out = arima_forward(source, params, PRED_LEN)
    out = jax.block_until_ready(out)
    ref = arima_reference(source, params, PRED_LEN)
    assert out.shape == (B, PRED_LEN, D), out.shape
    np.testing.assert_allclose(np.asarray(out), np.asarray(ref),
                               rtol=1e-4, atol=1e-4)

    # Ragged-batch case (B not a multiple of the tile): exercises the masked
    # boundary block, the in-kernel row mask for the stats and a 2-step
    # "parallel" grid — no wrapper-side padding anywhere.
    B2 = 11
    source2 = jax.random.normal(ks[8], (B2, S, D), jnp.float32)
    out2 = jax.block_until_ready(arima_forward(source2, params, PRED_LEN))
    ref2 = arima_reference(source2, params, PRED_LEN)
    np.testing.assert_allclose(np.asarray(out2), np.asarray(ref2),
                               rtol=1e-4, atol=1e-4)

    print("KERNEL_OK")
</pallas_src>

<mosaic_0001>
module attributes {stable_mosaic.version = 11 : i64} {
  func.func @arima_kernel(%arg0: i32, %arg1: memref<4xf32, #tpu.memory_space<smem>>, %arg2: memref<2x32xf32, #tpu.memory_space<vmem>>, %arg3: memref<1x28xf32, #tpu.memory_space<vmem>>, %arg4: memref<28x16xf32, #tpu.memory_space<vmem>>, %arg5: memref<28x16xf32, #tpu.memory_space<vmem>>, %arg6: memref<2x16xf32, #tpu.memory_space<vmem>>, %arg7: memref<2x16xf32, #tpu.memory_space<vmem>>, %arg8: memref<1x8x128xf32, #tpu.memory_space<vmem>>) attributes {dimension_semantics = [#tpu.dimension_semantics<parallel>], iteration_bounds = array<i64: 1>, scalar_prefetch = 0 : i64, scratch_operands = 0 : i64, tpu.core_type = #tpu.core_type<tc>, window_params = [{transform_indices = @transform_0, window_bounds = array<i64: 4>}, {transform_indices = @transform_1, window_bounds = array<i64: 2, 32>}, {pipeline_mode = #tpu.pipeline_mode<synchronous>, transform_indices = @transform_2, window_bounds = array<i64: 1, 28>}, {pipeline_mode = #tpu.pipeline_mode<synchronous>, transform_indices = @transform_3, window_bounds = array<i64: 28, 16>}, {pipeline_mode = #tpu.pipeline_mode<synchronous>, transform_indices = @transform_4, window_bounds = array<i64: 28, 16>}, {transform_indices = @transform_5, window_bounds = array<i64: 2, 16>}, {transform_indices = @transform_6, window_bounds = array<i64: 2, 16>}, {transform_indices = @transform_7, window_bounds = array<i64: 1, 8, 128>}]} {
    %c0 = arith.constant 0 : index
    %c0_0 = arith.constant 0 : index
    %0 = vector.load %arg2[%c0, %c0_0] : memref<2x32xf32, #tpu.memory_space<vmem>>, vector<2x32xf32>
    %1 = vector.extract_strided_slice %0 {offsets = [0, 4], sizes = [2, 28], strides = [1, 1]} : vector<2x32xf32> to vector<2x28xf32>
    %2 = vector.extract_strided_slice %0 {offsets = [0, 0], sizes = [2, 28], strides = [1, 1]} : vector<2x32xf32> to vector<2x28xf32>
    %c0_1 = arith.constant 0 : index
    %c0_2 = arith.constant 0 : index
    %3 = vector.load %arg3[%c0_1, %c0_2] : memref<1x28xf32, #tpu.memory_space<vmem>>, vector<1x28xf32>
    %4 = vector.broadcast %3 : vector<1x28xf32> to vector<2x28xf32>
    %5 = arith.mulf %2, %4 : vector<2x28xf32>
    %6 = arith.subf %1, %5 : vector<2x28xf32>
    %cst = arith.constant 0.000000e+00 : f32
    %7 = vector.broadcast %cst : f32 to vector<2x1xf32>
    %8 = tpu.concatenate %7, %6, %7 in 1 : vector<2x1xf32>, vector<2x28xf32>, vector<2x1xf32> -> vector<2x30xf32>
    %cst_3 = arith.constant 0.000000e+00 : f32
    %9 = vector.broadcast %cst_3 : f32 to vector<2x28xf32>
    %c3 = arith.constant 3 : index
    %10 = memref.load %arg1[%c3] : memref<4xf32, #tpu.memory_space<smem>>
    %11 = vector.broadcast %10 : f32 to vector<2x28xf32>
    %12 = arith.addf %9, %11 : vector<2x28xf32>
    %c0_4 = arith.constant 0 : index
    %13 = memref.load %arg1[%c0_4] : memref<4xf32, #tpu.memory_space<smem>>
    %14 = vector.extract_strided_slice %8 {offsets = [0, 0], sizes = [2, 28], strides = [1, 1]} : vector<2x30xf32> to vector<2x28xf32>
    %15 = vector.broadcast %13 : f32 to vector<2x28xf32>
    %16 = arith.mulf %15, %14 : vector<2x28xf32>
    %17 = arith.addf %12, %16 : vector<2x28xf32>
    %c1 = arith.constant 1 : index
    %18 = memref.load %arg1[%c1] : memref<4xf32, #tpu.memory_space<smem>>
    %19 = vector.extract_strided_slice %8 {offsets = [0, 1], sizes = [2, 28], strides = [1, 1]} : vector<2x30xf32> to vector<2x28xf32>
    %20 = vector.broadcast %18 : f32 to vector<2x28xf32>
    %21 = arith.mulf %20, %19 : vector<2x28xf32>
    %22 = arith.addf %17, %21 : vector<2x28xf32>
    %c2 = arith.constant 2 : index
    %23 = memref.load %arg1[%c2] : memref<4xf32, #tpu.memory_space<smem>>
    %24 = vector.extract_strided_slice %8 {offsets = [0, 2], sizes = [2, 28], strides = [1, 1]} : vector<2x30xf32> to vector<2x28xf32>
    %25 = vector.broadcast %23 : f32 to vector<2x28xf32>
    %26 = arith.mulf %25, %24 : vector<2x28xf32>
    %27 = arith.addf %22, %26 : vector<2x28xf32>
    %c0_5 = arith.constant 0 : index
    %c0_6 = arith.constant 0 : index
    %28 = vector.load %arg4[%c0_5, %c0_6] : memref<28x16xf32, #tpu.memory_space<vmem>>, vector<28x16xf32>
    %cst_7 = arith.constant dense<0.000000e+00> : vector<2x16xf32>
    %29 = tpu.matmul %6, %28, %cst_7 {dimension_numbers = #tpu.dot_dimension_numbers<[1], [0], [0], [1], [0, 0, 1, 1], [], []>} : vector<2x28xf32>, vector<28x16xf32>, vector<2x16xf32> -> vector<2x16xf32>
    %c0_8 = arith.constant 0 : index
    %c0_9 = arith.constant 0 : index
    %30 = vector.load %arg6[%c0_8, %c0_9] : memref<2x16xf32, #tpu.memory_space<vmem>>, vector<2x16xf32>
    tpu.vector_store %arg6[%c0_8, %c0_9], %29 {strides = array<i32>} : memref<2x16xf32, #tpu.memory_space<vmem>>, vector<2x16xf32>,
    %31 = arith.subf %6, %27 : vector<2x28xf32>
    %c0_10 = arith.constant 0 : index
    %c0_11 = arith.constant 0 : index
    %32 = vector.load %arg5[%c0_10, %c0_11] : memref<28x16xf32, #tpu.memory_space<vmem>>, vector<28x16xf32>
    %cst_12 = arith.constant dense<0.000000e+00> : vector<2x16xf32>
    %33 = tpu.matmul %31, %32, %cst_12 {dimension_numbers = #tpu.dot_dimension_numbers<[1], [0], [0], [1], [0, 0, 1, 1], [], []>} : vector<2x28xf32>, vector<28x16xf32>, vector<2x16xf32> -> vector<2x16xf32>
    %c0_13 = arith.constant 0 : index
    %c0_14 = arith.constant 0 : index
    %34 = vector.load %arg7[%c0_13, %c0_14] : memref<2x16xf32, #tpu.memory_space<vmem>>, vector<2x16xf32>
    tpu.vector_store %arg7[%c0_13, %c0_14], %33 {strides = array<i32>} : memref<2x16xf32, #tpu.memory_space<vmem>>, vector<2x16xf32>,
    %35 = tpu.iota {dimensions = array<i32: 0>} : vector<2x28xi32>
    %c2_i32 = arith.constant 2 : i32
    %36 = arith.muli %arg0, %c2_i32 : i32
    %37 = vector.broadcast %36 : i32 to vector<2x28xi32>
    %38 = arith.addi %35, %37 : vector<2x28xi32>
    %c2_i32_15 = arith.constant 2 : i32
    %39 = vector.broadcast %c2_i32_15 : i32 to vector<2x28xi32>
    %40 = arith.cmpi slt, %38, %39 : vector<2x28xi32>
    %cst_16 = arith.constant 0.000000e+00 : f32
    %41 = vector.broadcast %cst_16 : f32 to vector<2x28xf32>
    %42 = arith.select %40, %6, %41 : vector<2x28xi1>, vector<2x28xf32>
    %43 = vector.shape_cast %42 : vector<2x28xf32> to vector<1x2x28xf32>
    %cst_17 = arith.constant dense<0.000000e+00> : vector<1xf32>
    %44 = vector.multi_reduction <add>, %43, %cst_17 [1, 2] : vector<1x2x28xf32> to vector<1xf32>
    %45 = vector.shape_cast %44 : vector<1xf32> to vector<1x1x1xf32>
    %46 = vector.extract %45[0, 0, 0] : f32 from vector<1x1x1xf32>
    %47 = arith.mulf %42, %42 : vector<2x28xf32>
    %48 = vector.shape_cast %47 : vector<2x28xf32> to vector<1x2x28xf32>
    %cst_18 = arith.constant dense<0.000000e+00> : vector<1xf32>
    %49 = vector.multi_reduction <add>, %48, %cst_18 [1, 2] : vector<1x2x28xf32> to vector<1xf32>
    %50 = vector.shape_cast %49 : vector<1xf32> to vector<1x1x1xf32>
    %51 = vector.extract %50[0, 0, 0] : f32 from vector<1x1x1xf32>
    %52 = tpu.iota {dimensions = array<i32: 1>} : vector<8x128xi32>
    %53 = tpu.iota {dimensions = array<i32: 0>} : vector<8x128xi32>
    %c0_i32 = arith.constant 0 : i32
    %54 = vector.broadcast %c0_i32 : i32 to vector<8x128xi32>
    %55 = arith.cmpi eq, %53, %54 : vector<8x128xi32>
    %c0_i32_19 = arith.constant 0 : i32
    %56 = vector.broadcast %c0_i32_19 : i32 to vector<8x128xi32>
    %57 = arith.cmpi eq, %52, %56 : vector<8x128xi32>
    %58 = arith.andi %55, %57 : vector<8x128xi1>
    %c0_i32_20 = arith.constant 0 : i32
    %59 = vector.broadcast %c0_i32_20 : i32 to vector<8x128xi32>
    %60 = arith.cmpi eq, %53, %59 : vector<8x128xi32>
    %c1_i32 = arith.constant 1 : i32
    %61 = vector.broadcast %c1_i32 : i32 to vector<8x128xi32>
    %62 = arith.cmpi eq, %52, %61 : vector<8x128xi32>
    %63 = arith.andi %60, %62 : vector<8x128xi1>
    %cst_21 = arith.constant 0.000000e+00 : f32
    %64 = vector.broadcast %51 : f32 to vector<8x128xf32>
    %65 = vector.broadcast %cst_21 : f32 to vector<8x128xf32>
    %66 = arith.select %63, %64, %65 : vector<8x128xi1>, vector<8x128xf32>
    %67 = vector.broadcast %46 : f32 to vector<8x128xf32>
    %68 = arith.select %58, %67, %66 : vector<8x128xi1>, vector<8x128xf32>
    %69 = vector.shape_cast %68 : vector<8x128xf32> to vector<1x8x128xf32>
    %c0_22 = arith.constant 0 : index
    %c0_23 = arith.constant 0 : index
    %c0_24 = arith.constant 0 : index
    %70 = vector.load %arg8[%c0_22, %c0_23, %c0_24] : memref<1x8x128xf32, #tpu.memory_space<vmem>>, vector<1x8x128xf32>
    tpu.vector_store %arg8[%c0_22, %c0_23, %c0_24], %69 {strides = array<i32>} : memref<1x8x128xf32, #tpu.memory_space<vmem>>, vector<1x8x128xf32>,
    return
  }
  func.func @transform_0(%arg0: i32) -> i32 {
    %c0_i32 = arith.constant 0 : i32
    %c0_i32_0 = arith.constant 0 : i32
    return %c0_i32 : i32
  }
  func.func @transform_1(%arg0: i32) -> (i32, i32) {
    %c0_i32 = arith.constant 0 : i32
    %c0_i32_0 = arith.constant 0 : i32
    return %arg0, %c0_i32 : i32, i32
  }
  func.func @transform_2(%arg0: i32) -> (i32, i32) {
    %c0_i32 = arith.constant 0 : i32
    %c0_i32_0 = arith.constant 0 : i32
    %c0_i32_1 = arith.constant 0 : i32
    return %c0_i32, %c0_i32_0 : i32, i32
  }
  func.func @transform_3(%arg0: i32) -> (i32, i32) {
    %c0_i32 = arith.constant 0 : i32
    %c0_i32_0 = arith.constant 0 : i32
    %c0_i32_1 = arith.constant 0 : i32
    return %c0_i32, %c0_i32_0 : i32, i32
  }
  func.func @transform_4(%arg0: i32) -> (i32, i32) {
    %c0_i32 = arith.constant 0 : i32
    %c0_i32_0 = arith.constant 0 : i32
    %c0_i32_1 = arith.constant 0 : i32
    return %c0_i32, %c0_i32_0 : i32, i32
  }
  func.func @transform_5(%arg0: i32) -> (i32, i32) {
    %c0_i32 = arith.constant 0 : i32
    %c0_i32_0 = arith.constant 0 : i32
    return %arg0, %c0_i32 : i32, i32
  }
  func.func @transform_6(%arg0: i32) -> (i32, i32) {
    %c0_i32 = arith.constant 0 : i32
    %c0_i32_0 = arith.constant 0 : i32
    return %arg0, %c0_i32 : i32, i32
  }
  func.func @transform_7(%arg0: i32) -> (i32, i32, i32) {
    %c0_i32 = arith.constant 0 : i32
    %c0_i32_0 = arith.constant 0 : i32
    %c0_i32_1 = arith.constant 0 : i32
    return %arg0, %c0_i32, %c0_i32_0 : i32, i32, i32
  }
}

</mosaic_0001>

<bundles_post_ra>
// kernel: tpu_custom_call.1
= control target key start
LH: loop header
LB: loop body
LE: loop exit
PB: predicated region body
PF: predicated region fallthrough
CT: control target
= control target key end

     0   :  { %13 = vsyncpa [#allocation4], 0  ;;  %s655_s0 = inlined_call_operand.vmem [shape: f32[4], index: 0, kind: input, shape index: {}]   ;;  %s656_s1 = inlined_call_operand.vmem [shape: f32[2,32], index: 1, kind: input, shape index: {}]   ;;  %s657_s2 = inlined_call_operand.vmem [shape: f32[1,28], index: 2, kind: input, shape index: {}]   ;;  %s658_s3 = inlined_call_operand.vmem [shape: f32[28,16], index: 3, kind: input, shape index: {}]   ;;  %s659_s4 = inlined_call_operand.vmem [shape: f32[28,16], index: 4, kind: input, shape index: {}]   ;;  %s660_s5 = inlined_call_operand.hbm [shape: f32[2,16], index: 5, kind: output, shape index: {0}]   ;;  %s661_s6 = inlined_call_operand.hbm [shape: f32[2,16], index: 6, kind: output, shape index: {1}]   ;;  %s662_s7 = inlined_call_operand.hbm [shape: f32[1,8,128], index: 7, kind: output, shape index: {2}]  }
   0x1   :  { %14 = vsyncpa [#allocation3], 0 }
   0x2   :  { %15 = vsyncpa [#allocation7], 0  ;;  %s22_s26 = sshll.u32 %s655_s0, 4  ;;  %s23_s26 = int_to_ptr.vmem [resolvable:$true] %s22_s26 }
   0x3   :  { %s418_s27 = scalar_lea.vmem %s23_s26, 16  ;;  %p423_p1 = scmp.lt.s32.totalorder %s23_s26, %s23_s26 }
   0x4   :  { %p419_p0 = scmp.ne.s32.totalorder %s23_s26, %s418_s27  ;;  %p424_p2 = scmp.lt.s32.totalorder %s418_s27, %s418_s27 }
   0x6   :  { %p425_p3 = por %p424_p2, %p423_p1 }
   0x8   :  { %p426_p4 = pnand %p425_p3, %p419_p0 }
   0xa   :  { %429 = shalt.err (!%p426_p4)
}
   0xb   :  { %s502_s28 = smov [#allocation2]  }
   0xc   :  { %25 = dma.vmem_to_smem %s23_s26, 16, %s502_s28, [#allocation4]  }
   0xd   :  { %496 = dma.done.wait [#allocation4], 16  }
   0xe   :  { %497 = vsyncadd [#allocation4], 4294967280 }
   0xf   :  { %37 = sfence }
  0x10   :  { %v38_v0 = vld [vmem:[%s656_s1] sm:$0x3]  ;;  %s503_s0 = smov 4   ;;  %s504_s10 = smov 125   ;;  %vm56_vm0 = vcmask 7168   ;;  %vm58_vm1 = vcmask 236544   ;;  %v256_v24 = vlaneseq }
  0x11   :  { %v347_v1 = vld [vmem:[%s657_s2] ss:$0 sm:$0xff]  ;;  %s349_s11 = sld [smem:[#allocation2 + $0x1]]  ;;  %s350_s12 = sld [smem:[#allocation2 + $0x2]]  ;;  %v84_v12 = vld [vmem:[%s658_s3 + $0x8] sm:$0xff]  ;;  %v506_v14 = vmov 0.0|0.0  }
  0x12   :  { %v46_v2 = vmul.f32 %v347_v1, %v38_v0  ;;  %s505_s1 = smov 127   ;;  %v83_v11 = vld [vmem:[%s658_s3] sm:$0xff]  ;;  %387 = vmatprep.subr.bf16.mxu0 %v506_v14  ;;  %394 = vmatprep.subr.bf16.mxu1 %v506_v14  ;;  %s507_s16 = smov 126   ;;  %v85_v16 = vld [vmem:[%s658_s3 + $0x10] sm:$0xff]  ;;  %v86_v17 = vld [vmem:[%s658_s3 + $0x18] sm:$0xf] }
  0x13   :  { %v388_v15 = vpack.c.bf16 %v84_v12, %v83_v11  ;;  %s63_s17 = sld [smem:[#allocation2]]  ;;  %s348_s18 = sld [smem:[#allocation2 + $0x3]]  ;;  %vm92_vm2 = vcmask 1043456   ;;  %v391_v18 = vpack.c.bf16 %v86_v17, %v85_v16  ;;  %vm508_vm3 = vmmov 1   ;;  %v173_v29 = vld [vmem:[%s659_s4] sm:$0xff]  ;;  %v174_v30 = vld [vmem:[%s659_s4 + $0x8] sm:$0xff] }
  0x14   :  { %48 = vrot.lane.b32.xlu0 %v46_v2, %s503_s0  ;;  %vm580_vm4 = vmpackc.low %vm92_vm2, %vm508_vm3  ;;  %vm509_vm5 = vmmov 0   ;;  %v510_v22 = vmov 0.0   ;;  %v587_v28 = vshrl.u32 %v256_v24, 7  ;;  %v175_v31 = vld [vmem:[%s659_s4 + $0x10] sm:$0xff]  ;;  %v395_v33 = vpack.c.bf16 %v174_v30, %v173_v29  ;;  %v176_v34 = vld [vmem:[%s659_s4 + $0x18] sm:$0xf] }
  0x15   :  { %389 = vmatpush3.bf16.msra.mxu0 %v388_v15  ;;  %373 = vmatprep.mubr.msk.f32.mxu0 %vm509_vm5, %v510_v22  ;;  %v398_v36 = vpack.c.bf16 %v176_v34, %v175_v31  ;;  %s511_s30 = smov 124   ;;  %vm89_vm7 = vcmask 228352   ;;  %vm267_vm8 = vcmask 222208   ;;  %s512_s4 = smov [#allocation5]   ;;  %vm166_vm9 = vcmask 123904  }
  0x16   :  { %390 = vmatprep.subr.bf16.mxu0 %v506_v14  ;;  %384 = vmatprep.mubr.msk.f32.mxu1 %vm509_vm5, %v510_v22  ;;  %vm261_vm6 = vcmp.lt.s32.totalorder %v587_v28, 2  ;;  %s311_s8 = sshll.u32 %s512_s4, 4  ;;  %s312_s8 = int_to_ptr.vmem [resolvable:$true] %s311_s8 }
  0x17   :  { %v68_v6 = vstv %s349_s11  ;;  %v76_v10 = vstv %s350_s12  ;;  %396 = vmatpush3.bf16.msra.mxu1 %v395_v33  ;;  %s430_s9 = scalar_lea.vmem %s312_s8, 32  ;;  %p435_p6 = scmp.lt.s32.totalorder %s312_s8, %s312_s8 }
  0x18   :  { %397 = vmatprep.subr.bf16.mxu1 %v506_v14  ;;  %p431_p5 = scmp.ne.s32.totalorder %s312_s8, %s430_s9  ;;  %p436_p7 = scmp.lt.s32.totalorder %s430_s9, %s430_s9 }
  0x19   :  { %v64_v19 = vstv %s63_s17  ;;  %393 = vmatpush3.bf16.msk.msra.mxu0 %vm580_vm4, %v391_v18  ;;  %v61_v23 = vstv %s348_s18 }
  0x1a   :  { %p437_p8 = por %p436_p7, %p435_p6 }
  0x1b   :  { %400 = vmatpush3.bf16.msk.msra.mxu1 %vm580_vm4, %v398_v36 }
  0x1c   :  { %p438_p9 = pnand %p437_p8, %p431_p5 }
  0x86   :  { %v49_v3 = vpop.permute.xlu0 %48 }
  0x87   :  { %v565_v4 = vsub.f32 %v38_v0, %v49_v3 }
  0x89   :  { %53 = vrot.lane.b32.xlu0 %v565_v4, %s504_s10  ;;  %v262_v37 = vsel %vm261_vm6, %v565_v4, 0.0 }
  0x8a   :  { %v278_v38 = vmul.f32 %v262_v37, %v262_v37 }
  0xfb   :  { %v54_v5 = vpop.permute.xlu0 %53 }
  0xfc   :  { %v57_v7 = vsel %vm56_vm0, 0.0, %v54_v5 }
  0xfd   :  { %v59_v8 = vsel %vm58_vm1, %v57_v7, 0.0 }
  0xfe   :  { %v69_v9 = vmul.f32 %v68_v6, %v59_v8  ;;  %v77_v13 = vmul.f32 %v76_v10, %v59_v8  ;;  %v65_v21 = vmul.f32 %v64_v19, %v59_v8 }
 0x100   :  { %71 = vrot.lane.b32.xlu1 %v69_v9, %s505_s1  ;;  %v66_v26 = vadd.f32 %v65_v21, %v61_v23 }
 0x104   :  { %79 = vrot.lane.b32.xlu1 %v77_v13, %s507_s16 }
 0x172   :  { %v72_v25 = vpop.permute.xlu1 %71 }
 0x173   :  { %v74_v27 = vadd.f32 %v72_v25, %v66_v26 }
 0x176   :  { %v80_v32 = vpop.permute.xlu1 %79 }
 0x177   :  { %v82_v35 = vadd.f32 %v80_v32, %v74_v27 }
 0x179   :  { %169 = vrot.lane.b32.xlu0 %v82_v35, %s503_s0 }
 0x17d   :  { %87 = vrot.lane.b32.xlu0 %v565_v4, %s511_s30 }
 0x181   :  { %280 = vrot.lane.b32.xlu0 %v278_v38, %s511_s30 }
 0x1eb   :  { %v170_v39 = vpop.permute.xlu0 %169 }
 0x1ec   :  { %v172_v40 = vsub.f32 %v565_v4, %v170_v39 }
 0x1ee   :  { %178 = vrot.lane.b32.xlu1 %v172_v40, %s511_s30 }
 0x1ef   :  { %v88_v41 = vpop.permute.xlu0 %87 }
 0x1f0   :  { %374 = vmatmul.mubr.msk.f32.vlgmr.msra.gmra.mrb[0].mxu0 %vm89_vm7, %v88_v41 }
 0x1f2   :  { %264 = vrot.lane.b32.xlu1 %v262_v37, %s511_s30 }
 0x1f3   :  { %v281_v42 = vpop.permute.xlu0 %280 }
 0x1f4   :  { %v283_v43 = vsel %vm267_vm8, %v281_v42, 0.0 }
 0x1f5   :  { %284 = vadd.xlane.f32.xlu0 %v283_v43 }
 0x260   :  { %v179_v44 = vpop.permute.xlu1 %178 }
 0x261   :  { %385 = vmatmul.mubr.msk.f32.vlgmr.msra.gmra.mrb[0].mxu1 %vm89_vm7, %v179_v44 }
 0x264   :  { %v265_v45 = vpop.permute.xlu1 %264 }
 0x265   :  { %v268_v46 = vsel %vm267_vm8, %v265_v45, 0.0 }
 0x266   :  { %269 = vadd.xlane.f32.xlu1 %v268_v46 }
 0x2c3   :  { %v162_v47 = vpop.f32.mrb[0].mxu0 }
 0x2c4   :  { %v375_v48 = vpop.f32.mrb[1].mxu0  ;;  %167 = vst.msk [vmem:[#allocation5] sm:$0x3] %vm166_vm9, %v162_v47 }
 0x2c5   :  { %441 = shalt.err (!%p438_p9)
}
 0x2c6   :  { %s442_s11 = scalar_lea.hbm %s660_s5, 32 }
 0x2c7   :  { %p443_p10 = scmp.ne.s32.totalorder %s660_s5, %s442_s11  ;;  %p446_p11 = scmp.lt.u32.totalorder %s442_s11, %s660_s5 }
 0x2c9   :  { %p448_p12 = pnand %p446_p11, %p443_p10 }
 0x2cb   :  { %451 = shalt.err (!%p448_p12)
}
 0x2cc   :  { %314 = dma.vmem_to_hbm [thread:$0]  %s312_s8, 32, %s660_s5, [#allocation3]   ;;  %v285_v49 = vpop.xlane.xlu0 %284  ;;  %v294_v63 = vand.u32 127, %v256_v24  ;;  %vm295_vm10 = vcmp.eq.s32.totalorder %v587_v28, 0 }
 0x2cd   :  { %v286_v50 = vrot.slane %v285_v49, 4  ;;  %s513_s5 = smov [#allocation6]   ;;  %s514_s18 = smov [#allocation8]  }
 0x2ce   :  { %vm298_vm11 = vcmp.eq.s32.totalorder %v294_v63, 1  ;;  %vm296_vm12 = vcmp.eq.s32.totalorder %v294_v63, 0  ;;  %s321_s16 = sshll.u32 %s513_s5, 4  ;;  %s331_s19 = sshll.u32 %s514_s18, 4  ;;  %s322_s16 = int_to_ptr.vmem [resolvable:$true] %s321_s16  ;;  %s623_s19 = int_to_ptr.vmem [resolvable:$true] %s331_s19 }
 0x2cf   :  { %v287_v51 = vadd.f32 %v286_v50, %v285_v49  ;;  %vm299_vm13 = vmand %vm295_vm10, %vm298_vm11  ;;  %s452_s21 = scalar_lea.vmem %s322_s16, 32  ;;  %p457_p0 = scmp.lt.s32.totalorder %s322_s16, %s322_s16 }
 0x2d0   :  { %vm297_vm14 = vmand %vm295_vm10, %vm296_vm12  ;;  %p453_p13 = scmp.ne.s32.totalorder %s322_s16, %s452_s21  ;;  %p458_p1 = scmp.lt.s32.totalorder %s452_s21, %s452_s21 }
 0x2d1   :  { %v288_v52 = vrot.slane %v287_v51, 2 }
 0x2d2   :  { %p459_p2 = por %p458_p1, %p457_p0 }
 0x2d3   :  { %v289_v56 = vadd.f32 %v288_v52, %v287_v51 }
 0x2d4   :  { %p460_p3 = pnand %p459_p2, %p453_p13 }
 0x2d5   :  { %v290_v59 = vrot.slane %v289_v56, 1 }
 0x2d7   :  { %v291_v62 = vadd.f32 %v290_v59, %v289_v56 }
 0x2f3   :  { %v270_v53 = vpop.xlane.xlu1 %269 }
 0x2f4   :  { %v271_v54 = vrot.slane %v270_v53, 4 }
 0x2f6   :  { %v272_v55 = vadd.f32 %v271_v54, %v270_v53 }
 0x2f8   :  { %v273_v57 = vrot.slane %v272_v55, 2 }
 0x2fa   :  { %v274_v58 = vadd.f32 %v273_v57, %v272_v55 }
 0x2fc   :  { %v275_v60 = vrot.slane %v274_v58, 1 }
 0x2fe   :  { %v276_v61 = vadd.f32 %v275_v60, %v274_v58 }
 0x300   :  { %401 = vpush %v276_v61 }
 0x301   :  { %403 = vpush %v291_v62 }
 0x331   :  { %s402_s17 = spop %401 }
 0x332   :  { %v302_v0 = vstv %s402_s17  ;;  %s404_s20 = spop %403 }
 0x333   :  { %v300_v1 = vstv %s404_s20 }
 0x334   :  { %v301_v2 = vsel %vm299_vm13, %v300_v1, 0.0  ;;  %v251_v3 = vpop.f32.mrb[0].mxu1 }
 0x335   :  { %v386_v4 = vpop.f32.mrb[1].mxu1  ;;  %255 = vst.msk [vmem:[#allocation6] sm:$0x3] %vm166_vm9, %v251_v3  ;;  %v303_v5 = vsel %vm297_vm14, %v302_v0, %v301_v2 }
 0x336   :  { %463 = shalt.err (!%p460_p3)
}
 0x337   :  { %s464_s23 = scalar_lea.hbm %s661_s6, 32 }
 0x338   :  { %p465_p4 = scmp.ne.s32.totalorder %s661_s6, %s464_s23  ;;  %p468_p5 = scmp.lt.u32.totalorder %s464_s23, %s661_s6 }
 0x33a   :  { %p470_p6 = pnand %p468_p5, %p465_p4 }
 0x33c   :  { %473 = shalt.err (!%p470_p6)
}
 0x33d   :  { %324 = dma.vmem_to_hbm [thread:$0]  %s322_s16, 32, %s661_s6, [#allocation7]   ;;  %304 = vst [vmem:[#allocation8] sm:$0xff] %v303_v5 }
 0x33e   :  { %s474_s30 = scalar_lea.vmem %s623_s19, 128  ;;  %p479_p8 = scmp.lt.s32.totalorder %s623_s19, %s623_s19 }
 0x33f   :  { %p475_p7 = scmp.ne.s32.totalorder %s623_s19, %s474_s30  ;;  %p480_p9 = scmp.lt.s32.totalorder %s474_s30, %s474_s30 }
 0x341   :  { %p481_p10 = por %p480_p9, %p479_p8 }
 0x343   :  { %p482_p11 = pnand %p481_p10, %p475_p7 }
 0x345   :  { %485 = shalt.err (!%p482_p11)
}
 0x346   :  { %s486_s9 = scalar_lea.hbm %s662_s7, 128 }
 0x347   :  { %p487_p12 = scmp.ne.s32.totalorder %s662_s7, %s486_s9  ;;  %p490_p13 = scmp.lt.u32.totalorder %s486_s9, %s662_s7 }
 0x349   :  { %p492_p0 = pnand %p490_p13, %p487_p12 }
 0x34b   :  { %495 = shalt.err (!%p492_p0)
}
 0x34c   :  { %334 = dma.vmem_to_hbm [thread:$0]  %s623_s19, 128, %s662_s7, [#allocation7]  }
 0x34d   :  { %498 = dma.done.wait [#allocation3], 32  }
 0x34e   :  { %499 = vsyncadd [#allocation3], 4294967264 }
 0x34f   :  { %500 = dma.done.wait [#allocation7], 160  }
 0x350   :  { %501 = vsyncadd [#allocation7], 4294967136 }
 0x351   :  { %344 = vsyncpa [#allocation3], 1 }
 0x352   :  { %345 = vsyncpa [#allocation7], 1 }
 0x353   :  { %346 = vsyncpa [#allocation4], 1 }

</bundles_post_ra>
